<compile_context>
chip_gen: v7x
topology: tpu7x:2x2x1
jax: 0.10.0
libtpu: 0.0.40
codegen_flags: <defaults>
</compile_context>

<pallas_src>
import functools

import jax
import jax.numpy as jnp
from jax.experimental import pallas as pl
from jax.experimental.pallas import tpu as pltpu


def mhsa_kernel(x_ref, wqkv_ref, wo_ref, bqkv_ref, bo_ref, o_ref,
                *, num_heads, head_dim, batch_tile, seq_len):
  """One block of `batch_tile` batch elements per grid step.

  Refs (VMEM tiles):
    x_ref    : (Bt, N, E_pad)
    wqkv_ref : (E_pad, 3*head_dim)  pre-transposed [Wq | Wk | Wv], head-major cols
    wo_ref   : (head_dim, E_pad)    pre-transposed (== W_o.T, zero-padded)
    bqkv_ref : (1, 3*head_dim)
    bo_ref   : (1, E_pad)
    o_ref    : (Bt, N, E_pad)
  """
  H = num_heads
  hd = head_dim
  e = hd // H                          # per-head feature dim (module quirk)
  N = seq_len
  Bt = batch_tile
  emb = x_ref.shape[2]
  scale = float(hd) ** 0.5

  x2d = x_ref[...].reshape(Bt * N, emb)        # collapse batch/seq -> MXU M dim

  # ---- fused Q/K/V projection: a single (Bt*N, E_pad) x (E_pad, 3*hd) matmul ----
  qkv = jnp.dot(x2d, wqkv_ref[...], preferred_element_type=jnp.float32)
  qkv = qkv + bqkv_ref[...]                    # f32 bias add
  # bf16 operands for the attention matmuls (f32 accumulation on the MXU).
  qkv3 = qkv.reshape(Bt, N, 3 * hd).astype(jnp.bfloat16)

  head_ctx = []
  for h in range(H):                           # H is small -> fully unrolled
    c0 = h * e
    q = qkv3[:, :, c0:c0 + e]                  # (Bt, N, e)
    k = qkv3[:, :, hd + c0:hd + c0 + e]        # (Bt, N, e)
    v = qkv3[:, :, 2 * hd + c0:2 * hd + c0 + e]

    # batched q . k^T contracting the last dims (no transpose materialised)
    s = jnp.einsum('bqd,bkd->bqk', q, k,
                   preferred_element_type=jnp.float32)          # (Bt, N, N) f32
    s_max = jnp.max(s, axis=-1, keepdims=True)
    p = jnp.exp(s - s_max)                                      # f32
    # softmax(...) / sqrt(head_dim) folded into one reciprocal multiply
    denom = jnp.sum(p, axis=-1, keepdims=True) * scale
    p = p * pl.reciprocal(denom, approx=True)

    ctx = jnp.einsum('bqk,bkd->bqd', p.astype(jnp.bfloat16), v,
                     preferred_element_type=jnp.float32)        # (Bt, N, e)
    head_ctx.append(ctx)

  # head-major concat == einops 'b h n e -> b n (h e)'
  ctx_all = jnp.concatenate(head_ctx, axis=-1).reshape(Bt * N, hd)

  # ---- fused output projection: single (Bt*N, hd) x (hd, E_pad) matmul ----
  out = jnp.dot(ctx_all, wo_ref[...],
                preferred_element_type=jnp.float32) + bo_ref[...]
  o_ref[...] = out.reshape(Bt, N, emb)


def _pick_batch_tile(batch, seq, emb_pad, *, target_rows=256,
                     max_tile_bytes=4 << 20):
  """Largest divisor of `batch` whose (Bt, N, E_pad) f32 tile stays modest
  and whose row count Bt*N reaches ~256 (fills the MXU M dim)."""
  bt = 1
  for cand in range(1, batch + 1):
    if batch % cand:
      continue
    if cand * seq * emb_pad * 4 > max_tile_bytes:
      break
    bt = cand
    if cand * seq >= target_rows:
      break
  return bt


def multi_head_attention(x, params, *, num_heads):
  """Pallas wrapper. x: (B, N, E) float32."""
  B, N, E = x.shape
  H = num_heads
  hd = E // H                              # head_dim

  # Pad the embedding (lane) dim up to a multiple of 128 -> dense vst/vld.
  E_pad = ((E + 127) // 128) * 128

  w_qk, b_qk = params["w_qk"], params["b_qk"]      # (2*hd, E), (2*hd,)
  w_v, b_v = params["w_v"], params["b_v"]          # (hd, E),   (hd,)
  w_o, b_o = params["w_o"], params["b_o"]          # (E, hd),   (E,)

  # --- parameter plumbing (plain JAX glue, mirrors the einops rearranges) ---
  # '(h e qk)': q at even output features, k at odd, head-major within.
  # Pre-transpose + fuse [Wq | Wk | Wv]; zero-pad the E (contraction) axis.
  f32 = jnp.float32
  wq = w_qk[0::2, :].T                              # (E, hd) head-major cols
  wk = w_qk[1::2, :].T
  wv = w_v.T
  wqkv = jnp.zeros((E_pad, 3 * hd), f32).at[:E, :].set(
      jnp.concatenate([wq, wk, wv], axis=1))
  bqkv = jnp.concatenate([b_qk[0::2], b_qk[1::2], b_v]).reshape(1, 3 * hd)
  wo = jnp.zeros((hd, E_pad), f32).at[:, :E].set(w_o.T)
  bo = jnp.zeros((1, E_pad), f32).at[:, :E].set(b_o.reshape(1, E))

  xp = x if E_pad == E else jnp.pad(x, ((0, 0), (0, 0), (0, E_pad - E)))

  Bt = _pick_batch_tile(B, N, E_pad)
  grid = (B // Bt,)

  kernel = functools.partial(mhsa_kernel, num_heads=H, head_dim=hd,
                             batch_tile=Bt, seq_len=N)

  # grid-invariant (weight / bias) inputs: same block every step
  const = lambda shape: pl.BlockSpec(shape, lambda b: (0,) * len(shape))

  out = pl.pallas_call(
      kernel,
      out_shape=jax.ShapeDtypeStruct((B, N, E_pad), jnp.float32),
      grid_spec=pltpu.PrefetchScalarGridSpec(
          num_scalar_prefetch=0,
          grid=grid,
          in_specs=[
              pl.BlockSpec((Bt, N, E_pad), lambda b: (b, 0, 0)),   # x
              const((E_pad, 3 * hd)),                              # wqkv
              const((hd, E_pad)),                                  # wo
              const((1, 3 * hd)),                                  # bqkv
              const((1, E_pad)),                                   # bo
          ],
          out_specs=pl.BlockSpec((Bt, N, E_pad), lambda b: (b, 0, 0)),
      ),
      compiler_params=pltpu.CompilerParams(
          dimension_semantics=("parallel",)),
  )(xp, wqkv, wo, bqkv, bo)

  return out[:, :, :E] if E_pad != E else out


def mhsa_reference(x, params, *, num_heads):
  """Pure-JAX reference reproducing the PyTorch/einops forward exactly."""
  B, N, E = x.shape
  H = num_heads
  head_dim = E // H
  e = head_dim // H

  qk = x @ params["w_qk"].T + params["b_qk"]                 # (B, N, 2*hd)
  v = x @ params["w_v"].T + params["b_v"]                    # (B, N, hd)

  # 'b n (h e qk) -> qk b h n e'
  qk_r = qk.reshape(B, N, H, e, 2).transpose(4, 0, 2, 1, 3)
  queries, keys = qk_r[0], qk_r[1]                           # (B, H, N, e)
  # 'b n (h e k) -> k b h n e', k=1
  values = v.reshape(B, N, H, e, 1).transpose(4, 0, 2, 1, 3)[0]

  dots = jnp.einsum("bhqd,bhkd->bhqk", queries, keys)
  attn = jax.nn.softmax(dots, axis=-1) / (head_dim ** 0.5)
  ctx = jnp.einsum("bhsl,bhlv->bhsv", attn, values)          # (B, H, N, e)
  concat = ctx.transpose(0, 2, 1, 3).reshape(B, N, H * e)    # 'b h n e -> b n (h e)'
  return concat @ params["w_o"].T + params["b_o"]            # (B, N, E)


def init_params(key, embedding_dim, num_heads):
  head_dim = embedding_dim // num_heads
  ks = jax.random.split(key, 6)
  s = 0.05
  return {
      "w_qk": s * jax.random.normal(ks[0], (2 * head_dim, embedding_dim), jnp.float32),
      "b_qk": s * jax.random.normal(ks[1], (2 * head_dim,), jnp.float32),
      "w_v": s * jax.random.normal(ks[2], (head_dim, embedding_dim), jnp.float32),
      "b_v": s * jax.random.normal(ks[3], (head_dim,), jnp.float32),
      "w_o": s * jax.random.normal(ks[4], (embedding_dim, head_dim), jnp.float32),
      "b_o": s * jax.random.normal(ks[5], (embedding_dim,), jnp.float32),
  }


if __name__ == "__main__":
  B, N, E, H = 2, 8, 32, 2          # batch, seq, embedding_dim, num_heads
  key = jax.random.PRNGKey(0)
  k_x, k_p = jax.random.split(key)
  x = jax.random.normal(k_x, (B, N, E), jnp.float32)
  params = init_params(k_p, E, H)

  out = multi_head_attention(x, params, num_heads=H)
  out = jax.block_until_ready(out)

  ref = mhsa_reference(x, params, num_heads=H)
  assert out.shape == (B, N, E)
  # bf16 score/context matmuls + approx reciprocal -> slightly looser tolerance
  assert jnp.allclose(out, ref, atol=1e-2, rtol=1e-2), (
      float(jnp.max(jnp.abs(out - ref))))
  print("KERNEL_OK")
</pallas_src>

<mosaic_0001>
module attributes {stable_mosaic.version = 11 : i64} {
  func.func @mhsa_kernel(%arg0: i32, %arg1: memref<2x8x128xf32, #tpu.memory_space<vmem>>, %arg2: memref<128x48xf32, #tpu.memory_space<vmem>>, %arg3: memref<16x128xf32, #tpu.memory_space<vmem>>, %arg4: memref<1x48xf32, #tpu.memory_space<vmem>>, %arg5: memref<1x128xf32, #tpu.memory_space<vmem>>, %arg6: memref<2x8x128xf32, #tpu.memory_space<vmem>>) attributes {dimension_semantics = [#tpu.dimension_semantics<parallel>], iteration_bounds = array<i64: 1>, scalar_prefetch = 0 : i64, scratch_operands = 0 : i64, tpu.core_type = #tpu.core_type<tc>, window_params = [{transform_indices = @transform_0, window_bounds = array<i64: 2, 8, 128>}, {pipeline_mode = #tpu.pipeline_mode<synchronous>, transform_indices = @transform_1, window_bounds = array<i64: 128, 48>}, {pipeline_mode = #tpu.pipeline_mode<synchronous>, transform_indices = @transform_2, window_bounds = array<i64: 16, 128>}, {pipeline_mode = #tpu.pipeline_mode<synchronous>, transform_indices = @transform_3, window_bounds = array<i64: 1, 48>}, {pipeline_mode = #tpu.pipeline_mode<synchronous>, transform_indices = @transform_4, window_bounds = array<i64: 1, 128>}, {transform_indices = @transform_5, window_bounds = array<i64: 2, 8, 128>}]} {
    %c0 = arith.constant 0 : index
    %c0_0 = arith.constant 0 : index
    %c0_1 = arith.constant 0 : index
    %0 = vector.load %arg1[%c0, %c0_0, %c0_1] : memref<2x8x128xf32, #tpu.memory_space<vmem>>, vector<2x8x128xf32>
    %1 = vector.shape_cast %0 : vector<2x8x128xf32> to vector<16x128xf32>
    %c0_2 = arith.constant 0 : index
    %c0_3 = arith.constant 0 : index
    %2 = vector.load %arg2[%c0_2, %c0_3] : memref<128x48xf32, #tpu.memory_space<vmem>>, vector<128x48xf32>
    %cst = arith.constant dense<0.000000e+00> : vector<16x48xf32>
    %3 = tpu.matmul %1, %2, %cst {dimension_numbers = #tpu.dot_dimension_numbers<[1], [0], [0], [1], [0, 0, 1, 1], [], []>} : vector<16x128xf32>, vector<128x48xf32>, vector<16x48xf32> -> vector<16x48xf32>
    %c0_4 = arith.constant 0 : index
    %c0_5 = arith.constant 0 : index
    %4 = vector.load %arg4[%c0_4, %c0_5] : memref<1x48xf32, #tpu.memory_space<vmem>>, vector<1x48xf32>
    %5 = vector.broadcast %4 : vector<1x48xf32> to vector<16x48xf32>
    %6 = arith.addf %3, %5 : vector<16x48xf32>
    %7 = vector.shape_cast %6 : vector<16x48xf32> to vector<2x8x48xf32>
    %8 = arith.truncf %7 : vector<2x8x48xf32> to vector<2x8x48xbf16>
    %9 = vector.extract_strided_slice %8 {offsets = [0, 0, 0], sizes = [2, 8, 8], strides = [1, 1, 1]} : vector<2x8x48xbf16> to vector<2x8x8xbf16>
    %10 = vector.extract_strided_slice %8 {offsets = [0, 0, 16], sizes = [2, 8, 8], strides = [1, 1, 1]} : vector<2x8x48xbf16> to vector<2x8x8xbf16>
    %11 = vector.extract_strided_slice %8 {offsets = [0, 0, 32], sizes = [2, 8, 8], strides = [1, 1, 1]} : vector<2x8x48xbf16> to vector<2x8x8xbf16>
    "tpu.trace_start"() <{level = 10 : i32, message = "bqd,bkd->bqk"}> : () -> ()
    %cst_6 = arith.constant dense<0.000000e+00> : vector<2x8x8xf32>
    %12 = tpu.matmul %9, %10, %cst_6 {dimension_numbers = #tpu.dot_dimension_numbers<[2], [2], [1], [1], [0, 0, 0, 1, 1, 1], [0], [0]>} : vector<2x8x8xbf16>, vector<2x8x8xbf16>, vector<2x8x8xf32> -> vector<2x8x8xf32>
    "tpu.trace_stop"() : () -> ()
    %cst_7 = arith.constant dense<0xFF800000> : vector<2x8xf32>
    %13 = vector.multi_reduction <maximumf>, %12, %cst_7 [2] : vector<2x8x8xf32> to vector<2x8xf32>
    %14 = vector.shape_cast %13 : vector<2x8xf32> to vector<2x8x1xf32>
    %15 = vector.broadcast %14 : vector<2x8x1xf32> to vector<2x8x8xf32>
    %16 = arith.subf %12, %15 : vector<2x8x8xf32>
    %17 = math.exp %16 : vector<2x8x8xf32>
    %cst_8 = arith.constant dense<0.000000e+00> : vector<2x8xf32>
    %18 = vector.multi_reduction <add>, %17, %cst_8 [2] : vector<2x8x8xf32> to vector<2x8xf32>
    %19 = vector.shape_cast %18 : vector<2x8xf32> to vector<2x8x1xf32>
    %cst_9 = arith.constant 4.000000e+00 : f32
    %20 = vector.broadcast %cst_9 : f32 to vector<2x8x1xf32>
    %21 = arith.mulf %19, %20 : vector<2x8x1xf32>
    %22 = tpu.reciprocal %21 {approx = true} : vector<2x8x1xf32> -> vector<2x8x1xf32>
    %23 = vector.broadcast %22 : vector<2x8x1xf32> to vector<2x8x8xf32>
    %24 = arith.mulf %17, %23 : vector<2x8x8xf32>
    %25 = arith.truncf %24 : vector<2x8x8xf32> to vector<2x8x8xbf16>
    "tpu.trace_start"() <{level = 10 : i32, message = "bqk,bkd->bqd"}> : () -> ()
    %cst_10 = arith.constant dense<0.000000e+00> : vector<2x8x8xf32>
    %26 = tpu.matmul %25, %11, %cst_10 {dimension_numbers = #tpu.dot_dimension_numbers<[2], [1], [1], [2], [0, 0, 0, 1, 1, 2], [0], [0]>} : vector<2x8x8xbf16>, vector<2x8x8xbf16>, vector<2x8x8xf32> -> vector<2x8x8xf32>
    "tpu.trace_stop"() : () -> ()
    %27 = vector.extract_strided_slice %8 {offsets = [0, 0, 8], sizes = [2, 8, 8], strides = [1, 1, 1]} : vector<2x8x48xbf16> to vector<2x8x8xbf16>
    %28 = vector.extract_strided_slice %8 {offsets = [0, 0, 24], sizes = [2, 8, 8], strides = [1, 1, 1]} : vector<2x8x48xbf16> to vector<2x8x8xbf16>
    %29 = vector.extract_strided_slice %8 {offsets = [0, 0, 40], sizes = [2, 8, 8], strides = [1, 1, 1]} : vector<2x8x48xbf16> to vector<2x8x8xbf16>
    "tpu.trace_start"() <{level = 10 : i32, message = "bqd,bkd->bqk"}> : () -> ()
    %cst_11 = arith.constant dense<0.000000e+00> : vector<2x8x8xf32>
    %30 = tpu.matmul %27, %28, %cst_11 {dimension_numbers = #tpu.dot_dimension_numbers<[2], [2], [1], [1], [0, 0, 0, 1, 1, 1], [0], [0]>} : vector<2x8x8xbf16>, vector<2x8x8xbf16>, vector<2x8x8xf32> -> vector<2x8x8xf32>
    "tpu.trace_stop"() : () -> ()
    %cst_12 = arith.constant dense<0xFF800000> : vector<2x8xf32>
    %31 = vector.multi_reduction <maximumf>, %30, %cst_12 [2] : vector<2x8x8xf32> to vector<2x8xf32>
    %32 = vector.shape_cast %31 : vector<2x8xf32> to vector<2x8x1xf32>
    %33 = vector.broadcast %32 : vector<2x8x1xf32> to vector<2x8x8xf32>
    %34 = arith.subf %30, %33 : vector<2x8x8xf32>
    %35 = math.exp %34 : vector<2x8x8xf32>
    %cst_13 = arith.constant dense<0.000000e+00> : vector<2x8xf32>
    %36 = vector.multi_reduction <add>, %35, %cst_13 [2] : vector<2x8x8xf32> to vector<2x8xf32>
    %37 = vector.shape_cast %36 : vector<2x8xf32> to vector<2x8x1xf32>
    %cst_14 = arith.constant 4.000000e+00 : f32
    %38 = vector.broadcast %cst_14 : f32 to vector<2x8x1xf32>
    %39 = arith.mulf %37, %38 : vector<2x8x1xf32>
    %40 = tpu.reciprocal %39 {approx = true} : vector<2x8x1xf32> -> vector<2x8x1xf32>
    %41 = vector.broadcast %40 : vector<2x8x1xf32> to vector<2x8x8xf32>
    %42 = arith.mulf %35, %41 : vector<2x8x8xf32>
    %43 = arith.truncf %42 : vector<2x8x8xf32> to vector<2x8x8xbf16>
    "tpu.trace_start"() <{level = 10 : i32, message = "bqk,bkd->bqd"}> : () -> ()
    %cst_15 = arith.constant dense<0.000000e+00> : vector<2x8x8xf32>
    %44 = tpu.matmul %43, %29, %cst_15 {dimension_numbers = #tpu.dot_dimension_numbers<[2], [1], [1], [2], [0, 0, 0, 1, 1, 2], [0], [0]>} : vector<2x8x8xbf16>, vector<2x8x8xbf16>, vector<2x8x8xf32> -> vector<2x8x8xf32>
    "tpu.trace_stop"() : () -> ()
    %45 = tpu.concatenate %26, %44 in 2 : vector<2x8x8xf32>, vector<2x8x8xf32> -> vector<2x8x16xf32>
    %46 = vector.shape_cast %45 : vector<2x8x16xf32> to vector<16x16xf32>
    %c0_16 = arith.constant 0 : index
    %c0_17 = arith.constant 0 : index
    %47 = vector.load %arg3[%c0_16, %c0_17] : memref<16x128xf32, #tpu.memory_space<vmem>>, vector<16x128xf32>
    %cst_18 = arith.constant dense<0.000000e+00> : vector<16x128xf32>
    %48 = tpu.matmul %46, %47, %cst_18 {dimension_numbers = #tpu.dot_dimension_numbers<[1], [0], [0], [1], [0, 0, 1, 1], [], []>} : vector<16x16xf32>, vector<16x128xf32>, vector<16x128xf32> -> vector<16x128xf32>
    %c0_19 = arith.constant 0 : index
    %c0_20 = arith.constant 0 : index
    %49 = vector.load %arg5[%c0_19, %c0_20] : memref<1x128xf32, #tpu.memory_space<vmem>>, vector<1x128xf32>
    %50 = vector.broadcast %49 : vector<1x128xf32> to vector<16x128xf32>
    %51 = arith.addf %48, %50 : vector<16x128xf32>
    %52 = vector.shape_cast %51 : vector<16x128xf32> to vector<2x8x128xf32>
    %c0_21 = arith.constant 0 : index
    %c0_22 = arith.constant 0 : index
    %c0_23 = arith.constant 0 : index
    %53 = vector.load %arg6[%c0_21, %c0_22, %c0_23] : memref<2x8x128xf32, #tpu.memory_space<vmem>>, vector<2x8x128xf32>
    tpu.vector_store %arg6[%c0_21, %c0_22, %c0_23], %52 {strides = array<i32>} : memref<2x8x128xf32, #tpu.memory_space<vmem>>, vector<2x8x128xf32>,
    return
  }
  func.func @transform_0(%arg0: i32) -> (i32, i32, i32) {
    %c0_i32 = arith.constant 0 : i32
    %c0_i32_0 = arith.constant 0 : i32
    %c0_i32_1 = arith.constant 0 : i32
    return %arg0, %c0_i32, %c0_i32_0 : i32, i32, i32
  }
  func.func @transform_1(%arg0: i32) -> (i32, i32) {
    %c0_i32 = arith.constant 0 : i32
    %c0_i32_0 = arith.constant 0 : i32
    %c0_i32_1 = arith.constant 0 : i32
    return %c0_i32, %c0_i32_0 : i32, i32
  }
  func.func @transform_2(%arg0: i32) -> (i32, i32) {
    %c0_i32 = arith.constant 0 : i32
    %c0_i32_0 = arith.constant 0 : i32
    %c0_i32_1 = arith.constant 0 : i32
    return %c0_i32, %c0_i32_0 : i32, i32
  }
  func.func @transform_3(%arg0: i32) -> (i32, i32) {
    %c0_i32 = arith.constant 0 : i32
    %c0_i32_0 = arith.constant 0 : i32
    %c0_i32_1 = arith.constant 0 : i32
    return %c0_i32, %c0_i32_0 : i32, i32
  }
  func.func @transform_4(%arg0: i32) -> (i32, i32) {
    %c0_i32 = arith.constant 0 : i32
    %c0_i32_0 = arith.constant 0 : i32
    %c0_i32_1 = arith.constant 0 : i32
    return %c0_i32, %c0_i32_0 : i32, i32
  }
  func.func @transform_5(%arg0: i32) -> (i32, i32, i32) {
    %c0_i32 = arith.constant 0 : i32
    %c0_i32_0 = arith.constant 0 : i32
    %c0_i32_1 = arith.constant 0 : i32
    return %arg0, %c0_i32, %c0_i32_0 : i32, i32, i32
  }
}

</mosaic_0001>

<bundles_post_ra>
// kernel: tpu_custom_call.1
= control target key start
LH: loop header
LB: loop body
LE: loop exit
PB: predicated region body
PF: predicated region fallthrough
CT: control target
= control target key end

     0   :  { %s1106_s0 = inlined_call_operand.vmem [shape: f32[2,8,128], index: 0, kind: input, shape index: {}]   ;;  %s1107_s1 = inlined_call_operand.vmem [shape: f32[128,48], index: 1, kind: input, shape index: {}]   ;;  %s1108_s2 = inlined_call_operand.vmem [shape: f32[16,128], index: 2, kind: input, shape index: {}]   ;;  %s1109_s3 = inlined_call_operand.vmem [shape: f32[1,48], index: 3, kind: input, shape index: {}]   ;;  %s1110_s4 = inlined_call_operand.vmem [shape: f32[1,128], index: 4, kind: input, shape index: {}]   ;;  %s1111_s5 = inlined_call_operand.hbm [shape: f32[2,8,128], index: 5, kind: output, shape index: {}]  }
   0x1   :  { %v24_v0 = vld [vmem:[%s1107_s1] sm:$0xff]  ;;  %v25_v1 = vld [vmem:[%s1107_s1 + $0x8] sm:$0xff]  ;;  %v26_v2 = vld [vmem:[%s1107_s1 + $0x10] sm:$0xff] }
   0x2   :  { %v827_v3 = vpack.c.bf16 %v25_v1, %v24_v0  ;;  %v27_v4 = vld [vmem:[%s1107_s1 + $0x18] sm:$0xff]  ;;  %v28_v6 = vld [vmem:[%s1107_s1 + $0x20] sm:$0xff]  ;;  %v29_v7 = vld [vmem:[%s1107_s1 + $0x28] sm:$0xff] }
   0x3   :  { %v831_v5 = vpack.c.bf16 %v27_v4, %v26_v2  ;;  %v835_v8 = vpack.c.bf16 %v29_v7, %v28_v6  ;;  %v22_v9 = vld [vmem:[%s1106_s0] sm:$0xff]  ;;  %v30_v10 = vld [vmem:[%s1107_s1 + $0x30] sm:$0xff]  ;;  %v31_v11 = vld [vmem:[%s1107_s1 + $0x38] sm:$0xff] }
   0x4   :  { %828 = vmatprep.subr.bf16.mxu0 %v827_v3  ;;  %769 = vmatprep.mubr.f32.mxu0 %v22_v9 }
   0x5   :  { %830 = vmatpush3.bf16.msra.mxu0 %v827_v3 }
   0x6   :  { %832 = vmatprep.subr.bf16.mxu0 %v831_v5 }
   0x7   :  { %10 = vsyncpa [#allocation3], 0  ;;  %v839_v12 = vpack.c.bf16 %v31_v11, %v30_v10  ;;  %v32_v13 = vld [vmem:[%s1107_s1 + $0x40] sm:$0xff]  ;;  %v33_v14 = vld [vmem:[%s1107_s1 + $0x48] sm:$0xff]  ;;  %v913_v26 = vmov 0.0   ;;  %vm914_vm0 = vmmov 0  }
   0x8   :  { %v843_v15 = vpack.c.bf16 %v33_v14, %v32_v13  ;;  %v34_v16 = vld [vmem:[%s1107_s1 + $0x50] sm:$0xff]  ;;  %v35_v17 = vld [vmem:[%s1107_s1 + $0x58] sm:$0xff]  ;;  %v36_v19 = vld [vmem:[%s1107_s1 + $0x60] sm:$0xff]  ;;  %772 = vmatprep.subr.bf16.mxu1 %v913_v26  ;;  %774 = vmatprep.mubr.msk.bf16.mxu1 %vm914_vm0, %v913_v26  ;;  %vm127_vm1 = vcmask 64512   ;;  %s917_s30 = smov 104   ;;  %vm254_vm2 = vcmask 1043456  }
   0x9   :  { %834 = vmatpush3.bf16.msra.mxu0 %v831_v5  ;;  %v847_v18 = vpack.c.bf16 %v35_v17, %v34_v16  ;;  %v37_v20 = vld [vmem:[%s1107_s1 + $0x68] sm:$0xff]  ;;  %v38_v22 = vld [vmem:[%s1107_s1 + $0x70] sm:$0xff]  ;;  %v39_v23 = vld [vmem:[%s1107_s1 + $0x78] sm:$0xff]  ;;  %s918_s6 = smov 120   ;;  %s919_s7 = smov 88   ;;  %vm587_vm3 = vcmask 130048  }
   0xa   :  { %836 = vmatprep.subr.bf16.mxu0 %v835_v8  ;;  %v851_v21 = vpack.c.bf16 %v37_v20, %v36_v19  ;;  %v855_v24 = vpack.c.bf16 %v39_v23, %v38_v22  ;;  %v23_v25 = vld [vmem:[%s1106_s0 + $0x8] sm:$0xff]  ;;  %v687_v27 = vld [vmem:[%s1109_s3] ss:$0 sm:$0xff]  ;;  %s915_s0 = smov 112   ;;  %s916_s3 = smov 96  }
   0xb   :  { %s920_s12 = smov 8   ;;  %s921_s14 = smov [#allocation2]  }
   0xc   :  { %s676_s15 = sshll.u32 %s921_s14, 4  ;;  %s677_s15 = int_to_ptr.vmem [resolvable:$true] %s676_s15 }
   0xd   :  { %838 = vmatpush3.bf16.msra.mxu0 %v835_v8  ;;  %s889_s16 = scalar_lea.vmem %s677_s15, 256  ;;  %p894_p1 = scmp.lt.s32.totalorder %s677_s15, %s677_s15 }
   0xe   :  { %840 = vmatprep.subr.bf16.mxu0 %v839_v12  ;;  %p890_p0 = scmp.ne.s32.totalorder %s677_s15, %s889_s16  ;;  %p895_p2 = scmp.lt.s32.totalorder %s889_s16, %s889_s16 }
  0x10   :  { %p896_p3 = por %p895_p2, %p894_p1 }
  0x11   :  { %842 = vmatpush3.bf16.msra.mxu0 %v839_v12 }
  0x12   :  { %844 = vmatprep.subr.bf16.mxu0 %v843_v15  ;;  %p897_p4 = pnand %p896_p3, %p890_p0 }
  0x15   :  { %846 = vmatpush3.bf16.msra.mxu0 %v843_v15 }
  0x16   :  { %848 = vmatprep.subr.bf16.mxu0 %v847_v18 }
  0x19   :  { %850 = vmatpush3.bf16.msra.mxu0 %v847_v18 }
  0x1a   :  { %852 = vmatprep.subr.bf16.mxu0 %v851_v21 }
  0x1d   :  { %854 = vmatpush3.bf16.msra.mxu0 %v851_v21 }
  0x1e   :  { %856 = vmatprep.subr.bf16.mxu0 %v855_v24 }
  0x21   :  { %858 = vmatpush3.bf16.msra.mxu0 %v855_v24 }
  0x22   :  { %796 = vmatprep.subr.bf16.mxu0 %v913_v26 }
  0x24   :  { %770 = vmatmul.mubr.f32.vlgmr.msra.gmra.mrb[0].mxu0 %v23_v25 }
  0x25   :  { %798 = vmatprep.mubr.msk.bf16.mxu0 %vm914_vm0, %v913_v26 }
  0xf7   :  { %v771_v28 = vpop.f32.mrb[0].mxu0 }
  0xf8   :  { %v113_v29 = vpop.f32.mrb[1].mxu0  ;;  %v119_v31 = vadd.f32 %v771_v28, %v687_v27 }
  0xf9   :  { %v114_v30 = vadd.f32 %v687_v27, %v113_v29 }
  0xfa   :  { %v1019_v33 = vpack.c.bf16 %v119_v31, %v119_v31 }
  0xfb   :  { %v1016_v32 = vpack.c.bf16 %v114_v30, %v114_v30 }
  0xfd   :  { %125 = vrot.lane.b32.xlu0 %v1016_v32, %s915_s0 }
 0x101   :  { %175 = vrot.lane.b32.xlu0 %v1019_v33, %s915_s0 }
 0x16f   :  { %v126_v34 = vpop.permute.xlu0 %125 }
 0x170   :  { %v132_v35 = vsel %vm127_vm1, %v126_v34, 0 }
 0x171   :  { %773 = vmatpush3.bf16.xpose.msra.mxu1 %v132_v35 }
 0x172   :  { %778 = vmatprep.subr.bf16.mxu1 %v913_v26 }
 0x173   :  { %v176_v36 = vpop.permute.xlu0 %175 }
 0x174   :  { %v181_v37 = vsel %vm127_vm1, %v176_v36, 0 }
 0x178   :  { %775 = vmatmul.mubr.msk.bf16.vlgmr.msra.gmra.mrb[0].mxu1 %vm127_vm1, %v1016_v32 }
 0x179   :  { %779 = vmatpush3.bf16.xpose.msra.mxu1 %v181_v37  ;;  %780 = vmatprep.mubr.msk.bf16.mxu1 %vm914_vm0, %v913_v26 }
 0x17a   :  { %784 = vmatprep.subr.bf16.mxu1 %v913_v26 }
 0x180   :  { %781 = vmatmul.mubr.msk.bf16.vlgmr.msra.gmra.mrb[4].mxu1 %vm127_vm1, %v1019_v33 }
 0x181   :  { %786 = vmatprep.mubr.msk.bf16.mxu1 %vm914_vm0, %v913_v26 }
 0x24b   :  { %v168_v38 = vpop.f32.mrb[0].mxu1 }
 0x24c   :  { %v776_v39 = vpop.f32.mrb[1].mxu1  ;;  %v223_v40 = vsel %vm127_vm1, %v168_v38, -inf }
 0x24d   :  { %224 = vmax.xlane.f32.xlu1 %v223_v40  ;;  %v171_v41 = vpop.f32.mrb[2].mxu1 }
 0x24e   :  { %v777_v42 = vpop.f32.mrb[3].mxu1 }
 0x253   :  { %v217_v43 = vpop.f32.mrb[4].mxu1 }
 0x254   :  { %v782_v44 = vpop.f32.mrb[5].mxu1  ;;  %v226_v45 = vsel %vm127_vm1, %v217_v43, -inf }
 0x255   :  { %227 = vmax.xlane.f32.xlu1 %v226_v45  ;;  %v220_v46 = vpop.f32.mrb[6].mxu1 }
 0x256   :  { %v783_v47 = vpop.f32.mrb[7].mxu1 }
 0x266   :  { %249 = vrot.lane.b32.xlu1 %v1016_v32, %s916_s3 }
 0x26a   :  { %298 = vrot.lane.b32.xlu1 %v1019_v33, %s916_s3 }
 0x26e   :  { %348 = vrot.lane.b32.xlu1 %v1016_v32, %s917_s30 }
 0x2da   :  { %v225_v48 = vpop.xlane.xlu1 %224 }
 0x2db   :  { %v229_v49 = vsub.f32 %v168_v38, %v225_v48 }
 0x2dd   :  { %v231_v50 = vmul.f32 1.442695, %v229_v49 }
 0x2df   :  { %873 = vpow2.f32 %v231_v50 }
 0x2e2   :  { %v228_v51 = vpop.xlane.xlu1 %227 }
 0x2e3   :  { %v230_v52 = vsub.f32 %v217_v43, %v228_v51 }
 0x2e5   :  { %v233_v53 = vmul.f32 1.442695, %v230_v52 }
 0x2e6   :  { %v250_v54 = vpop.permute.xlu1 %249 }
 0x2e7   :  { %875 = vpow2.f32 %v233_v53  ;;  %v256_v55 = vsel %vm254_vm2, %v250_v54, 0 }
 0x2e8   :  { %785 = vmatpush3.bf16.msra.mxu1 %v256_v55 }
 0x2e9   :  { %v874_v56 = vpop.eup %873  ;;  %790 = vmatprep.subr.bf16.mxu1 %v913_v26 }
 0x2ea   :  { %v299_v57 = vpop.permute.xlu1 %298  ;;  %v235_v58 = vsel %vm127_vm1, %v874_v56, 0.0 }
 0x2eb   :  { %236 = vadd.xlane.f32.xlu0 %v235_v58  ;;  %v304_v7 = vsel %vm254_vm2, %v299_v57, 0  ;;  %v579_v57 = vld [vmem:[%s1108_s2 + $0x8] sm:$0xff] }
 0x2ee   :  { %v349_v59 = vpop.permute.xlu1 %348 }
 0x2ef   :  { %v354_v60 = vsel %vm127_vm1, %v349_v59, 0 }
 0x2f0   :  { %797 = vmatpush3.bf16.xpose.msra.mxu0 %v354_v60 }
 0x2f1   :  { %v876_v61 = vpop.eup %875  ;;  %808 = vmatprep.subr.bf16.mxu0 %v913_v26 }
 0x2f2   :  { %v238_v62 = vsel %vm127_vm1, %v876_v61, 0.0 }
 0x2f3   :  { %239 = vadd.xlane.f32.xlu1 %v238_v62 }
 0x301   :  { %346 = vrot.lane.b32.xlu0 %v1016_v32, %s918_s6 }
 0x304   :  { %398 = vrot.lane.b32.xlu1 %v1019_v33, %s917_s30 }
 0x308   :  { %396 = vrot.lane.b32.xlu1 %v1019_v33, %s918_s6 }
 0x378   :  { %v237_v63 = vpop.xlane.xlu0 %236 }
 0x379   :  { %v241_v0 = vmul.f32 4.0, %v237_v63 }
 0x37b   :  { %877 = vrcp.f32 %v241_v0 }
 0x37c   :  { %v347_v1 = vpop.permute.xlu0 %346 }
 0x37d   :  { %799 = vmatmul.mubr.msk.bf16.vlgmr.msra.gmra.mrb[4].mxu0 %vm127_vm1, %v347_v1 }
 0x37e   :  { %810 = vmatprep.mubr.msk.bf16.mxu0 %vm914_vm0, %v913_v26 }
 0x380   :  { %v240_v2 = vpop.xlane.xlu1 %239 }
 0x381   :  { %v242_v3 = vmul.f32 4.0, %v240_v2 }
 0x383   :  { %879 = vrcp.f32 %v242_v3 }
 0x384   :  { %v399_v10 = vpop.permute.xlu1 %398 }
 0x385   :  { %v878_v4 = vpop.eup %877  ;;  %v404_v12 = vsel %vm127_vm1, %v399_v10, 0 }
 0x386   :  { %v245_v5 = vmul.f32 %v878_v4, %v874_v56 }
 0x388   :  { %v247_v6 = vpack.c.bf16 %v245_v5, %v245_v5  ;;  %v397_v13 = vpop.permute.xlu1 %396 }
 0x38a   :  { %787 = vmatmul.mubr.msk.bf16.vlgmr.msra.gmra.mrb[8].mxu1 %vm127_vm1, %v247_v6 }
 0x38b   :  { %791 = vmatpush3.bf16.msra.mxu1 %v304_v7  ;;  %792 = vmatprep.mubr.msk.bf16.mxu1 %vm914_vm0, %v913_v26  ;;  %v696_v7 = vld [vmem:[%s1110_s4] ss:$0 sm:$0xff] }
 0x38c   :  { %802 = vmatprep.subr.bf16.mxu1 %v913_v26 }
 0x38d   :  { %v880_v8 = vpop.eup %879 }
 0x38e   :  { %v246_v9 = vmul.f32 %v880_v8, %v876_v61 }
 0x390   :  { %v248_v11 = vpack.c.bf16 %v246_v9, %v246_v9 }
 0x392   :  { %793 = vmatmul.mubr.msk.bf16.vlgmr.msra.gmra.mrb[12].mxu1 %vm127_vm1, %v248_v11 }
 0x393   :  { %804 = vmatprep.mubr.msk.bf16.mxu1 %vm914_vm0, %v913_v26 }
 0x394   :  { %803 = vmatpush3.bf16.xpose.msra.mxu1 %v404_v12 }
 0x395   :  { %814 = vmatprep.subr.bf16.mxu1 %v913_v26 }
 0x39b   :  { %805 = vmatmul.mubr.msk.bf16.vlgmr.msra.gmra.mrb[16].mxu1 %vm127_vm1, %v397_v13 }
 0x39c   :  { %816 = vmatprep.mubr.msk.bf16.mxu1 %vm914_vm0, %v913_v26 }
 0x450   :  { %v390_v14 = vpop.f32.mrb[4].mxu0 }
 0x451   :  { %v800_v15 = vpop.f32.mrb[5].mxu0  ;;  %v446_v16 = vsel %vm127_vm1, %v390_v14, -inf }
 0x452   :  { %447 = vmax.xlane.f32.xlu1 %v446_v16  ;;  %v393_v17 = vpop.f32.mrb[6].mxu0 }
 0x453   :  { %v801_v18 = vpop.f32.mrb[7].mxu0 }
 0x45d   :  { %v1065_v19 = vpop.f32.mrb[8].mxu1 }
 0x45e   :  { %v788_v20 = vpop.f32.mrb[9].mxu1 }
 0x45f   :  { %v295_v21 = vpop.f32.mrb[10].mxu1 }
 0x460   :  { %v789_v22 = vpop.f32.mrb[11].mxu1 }
 0x465   :  { %v1067_v23 = vpop.f32.mrb[12].mxu1 }
 0x466   :  { %v794_v24 = vpop.f32.mrb[13].mxu1 }
 0x467   :  { %v343_v25 = vpop.f32.mrb[14].mxu1 }
 0x468   :  { %v795_v27 = vpop.f32.mrb[15].mxu1 }
 0x46e   :  { %v440_v28 = vpop.f32.mrb[16].mxu1 }
 0x46f   :  { %v806_v29 = vpop.f32.mrb[17].mxu1  ;;  %v449_v26 = vsel %vm127_vm1, %v440_v28, -inf }
 0x470   :  { %450 = vmax.xlane.f32.xlu0 %v449_v26  ;;  %v443_v30 = vpop.f32.mrb[18].mxu1 }
 0x471   :  { %v807_v31 = vpop.f32.mrb[19].mxu1 }
 0x486   :  { %520 = vrot.lane.b32.xlu0 %v1019_v33, %s919_s7 }
 0x4df   :  { %v448_v34 = vpop.xlane.xlu1 %447 }
 0x4e0   :  { %v452_v35 = vsub.f32 %v390_v14, %v448_v34 }
 0x4e2   :  { %v454_v36 = vmul.f32 1.442695, %v452_v35 }
 0x4e4   :  { %881 = vpow2.f32 %v454_v36 }
 0x4ee   :  { %v882_v37 = vpop.eup %881 }
 0x4ef   :  { %v458_v38 = vsel %vm127_vm1, %v882_v37, 0.0 }
 0x4f0   :  { %459 = vadd.xlane.f32.xlu1 %v458_v38 }
 0x4fd   :  { %v451_v39 = vpop.xlane.xlu0 %450 }
 0x4fe   :  { %v453_v40 = vsub.f32 %v440_v28, %v451_v39 }
 0x500   :  { %v456_v41 = vmul.f32 1.442695, %v453_v40 }
 0x501   :  { %v521_v42 = vpop.permute.xlu0 %520 }
 0x502   :  { %883 = vpow2.f32 %v456_v41  ;;  %v526_v43 = vsel %vm254_vm2, %v521_v42, 0 }
 0x503   :  { %815 = vmatpush3.bf16.msra.mxu1 %v526_v43 }
 0x50c   :  { %v884_v44 = vpop.eup %883 }
 0x50d   :  { %v461_v45 = vsel %vm127_vm1, %v884_v44, 0.0 }
 0x50e   :  { %462 = vadd.xlane.f32.xlu1 %v461_v45 }
 0x51f   :  { %472 = vrot.lane.b32.xlu1 %v1016_v32, %s919_s7  ;;  %v578_v32 = vld [vmem:[%s1108_s2] sm:$0xff] }
 0x520   :  { %v859_v58 = vpack.c.bf16 %v579_v57, %v578_v32 }
 0x57d   :  { %v460_v33 = vpop.xlane.xlu1 %459 }
 0x57e   :  { %v464_v46 = vmul.f32 4.0, %v460_v33 }
 0x580   :  { %885 = vrcp.f32 %v464_v46 }
 0x58a   :  { %v886_v47 = vpop.eup %885 }
 0x58b   :  { %v468_v50 = vmul.f32 %v886_v47, %v882_v37 }
 0x58d   :  { %v470_v53 = vpack.c.bf16 %v468_v50, %v468_v50 }
 0x59b   :  { %v463_v48 = vpop.xlane.xlu1 %462 }
 0x59c   :  { %v465_v49 = vmul.f32 4.0, %v463_v48 }
 0x59e   :  { %887 = vrcp.f32 %v465_v49 }
 0x59f   :  { %v473_v51 = vpop.permute.xlu1 %472 }
 0x5a0   :  { %v478_v52 = vsel %vm254_vm2, %v473_v51, 0 }
 0x5a1   :  { %809 = vmatpush3.bf16.msra.mxu0 %v478_v52 }
 0x5a2   :  { %860 = vmatprep.subr.bf16.mxu0 %v859_v58 }
 0x5a4   :  { %811 = vmatmul.mubr.msk.bf16.vlgmr.msra.gmra.mrb[8].mxu0 %vm127_vm1, %v470_v53 }
 0x5a5   :  { %862 = vmatpush3.bf16.msra.mxu0 %v859_v58 }
 0x5a8   :  { %v888_v54 = vpop.eup %887 }
 0x5a9   :  { %v469_v55 = vmul.f32 %v888_v54, %v884_v44 }
 0x5ab   :  { %v471_v56 = vpack.c.bf16 %v469_v55, %v469_v55 }
 0x5ad   :  { %817 = vmatmul.mubr.msk.bf16.vlgmr.msra.gmra.mrb[20].mxu1 %vm127_vm1, %v471_v56 }
 0x677   :  { %v514_v59 = vpop.f32.mrb[8].mxu0 }
 0x678   :  { %570 = vrot.lane.b32.xlu1 %v514_v59, %s920_s12  ;;  %v812_v60 = vpop.f32.mrb[9].mxu0 }
 0x679   :  { %v517_v61 = vpop.f32.mrb[10].mxu0 }
 0x67a   :  { %v813_v62 = vpop.f32.mrb[11].mxu0 }
 0x680   :  { %v562_v63 = vpop.f32.mrb[20].mxu1 }
 0x681   :  { %572 = vrot.lane.b32.xlu1 %v562_v63, %s920_s12  ;;  %v818_v0 = vpop.f32.mrb[21].mxu1 }
 0x682   :  { %v565_v1 = vpop.f32.mrb[22].mxu1 }
 0x683   :  { %v819_v2 = vpop.f32.mrb[23].mxu1 }
 0x6ea   :  { %v571_v3 = vpop.permute.xlu1 %570 }
 0x6eb   :  { %v576_v4 = vsel %vm127_vm1, %v1065_v19, %v571_v3 }
 0x6ec   :  { %824 = vmatprep.mubr.msk.f32.mxu0 %vm587_vm3, %v576_v4 }
 0x6f3   :  { %v573_v5 = vpop.permute.xlu1 %572 }
 0x6f4   :  { %v577_v6 = vsel %vm127_vm1, %v1067_v23, %v573_v5 }
 0x6f5   :  { %825 = vmatmul.mubr.msk.f32.vlgmr.msra.gmra.mrb[2].mxu0 %vm587_vm3, %v577_v6 }
 0x7c8   :  { %v826_v8 = vpop.f32.mrb[2].mxu0 }
 0x7c9   :  { %v666_v9 = vadd.f32 %v826_v8, %v696_v7  ;;  %v660_v10 = vpop.f32.mrb[3].mxu0 }
 0x7ca   :  { %v661_v11 = vadd.f32 %v696_v7, %v660_v10 }
 0x7cb   :  { %670 = vst [vmem:[#allocation2 + $0x8] sm:$0xff] %v666_v9 }
 0x7cc   :  { %669 = vst [vmem:[#allocation2] sm:$0xff] %v661_v11 }
 0x7cd   :  { %900 = shalt.err (!%p897_p4)
}
 0x7ce   :  { %s901_s4 = scalar_lea.hbm %s1111_s5, 256 }
 0x7cf   :  { %p902_p5 = scmp.ne.s32.totalorder %s1111_s5, %s901_s4  ;;  %p905_p6 = scmp.lt.u32.totalorder %s901_s4, %s1111_s5 }
 0x7d1   :  { %p907_p7 = pnand %p905_p6, %p902_p5 }
 0x7d3   :  { %910 = shalt.err (!%p907_p7)
}
 0x7d4   :  { %s922_s23 = smov 128  }
 0x7d5   :  { %682 = dma.vmem_to_hbm [thread:$0]  %s677_s15, 256, %s1111_s5, [#allocation3], %s922_s23, %s922_s23, %s920_s12  }
 0x7d6   :  { %911 = dma.done.wait [#allocation3], 256  }
 0x7d7   :  { %912 = vsyncadd [#allocation3], 4294967040 }
 0x7d8   :  { %686 = vsyncpa [#allocation3], 1 }

</bundles_post_ra>
